<compile_context>
chip_gen: v7x
topology: tpu7x:2x2x1
jax: 0.10.0
libtpu: 0.0.40
codegen_flags: <defaults>
</compile_context>

<pallas_src>
import functools
import math

import jax
import jax.numpy as jnp
import numpy as np
from jax.experimental import pallas as pl
from jax.experimental.pallas import tpu as pltpu


def _pair(v):
    if isinstance(v, (tuple, list)):
        return tuple(v)
    return (v, v)


# ----------------------------------------------------------------------------
# Pallas kernel: one (group, batch-element) per grid step.
# ----------------------------------------------------------------------------
def _conv2d_dense_kernel(x_ref, w_ref, b_ref, o_ref, flat_ref, *,
                         H, W, Wp, ph, pw, KH, KW, dh, dw, L_dense,
                         compute_dtype):
    # x_ref    : (1, 1, C_in_g, H*W)             VMEM
    # w_ref    : (1, KH*KW, C_out_g, C_in_g)     VMEM
    # b_ref    : (1, C_out_g, 1)                 VMEM (f32)
    # o_ref    : (1, 1, C_out_g, L_dense)        VMEM
    # flat_ref : (C_in_g, L_flat)                VMEM scratch (flat padded img)
    xin = x_ref[0, 0]                            # (C_in_g, H*W)

    # ---- fused zero padding: stage the image into the flattened padded buffer
    flat_ref[...] = jnp.zeros_like(flat_ref)
    for h in range(H):                           # static, fully unrolled
        dst = (h + ph) * Wp + pw
        flat_ref[:, dst:dst + W] = xin[:, h * W:(h + 1) * W]

    # ---- KH*KW accumulated MXU matmuls over contiguous shifted windows
    c_out_g = w_ref.shape[2]
    acc = jnp.zeros((c_out_g, L_dense), jnp.float32)
    for kh in range(KH):
        for kw in range(KW):
            t = kh * KW + kw
            shift = kh * dh * Wp + kw * dw
            rhs = flat_ref[:, shift:shift + L_dense]     # (C_in_g, L_dense)
            lhs = w_ref[0, t]                            # (C_out_g, C_in_g)
            if compute_dtype is not None:
                lhs = lhs.astype(compute_dtype)
                rhs = rhs.astype(compute_dtype)
            acc = acc + jnp.dot(lhs, rhs, preferred_element_type=jnp.float32)

    o_ref[0, 0] = (acc + b_ref[0]).astype(o_ref.dtype)


# ----------------------------------------------------------------------------
# Wrapper: layout plumbing + pallas_call (all groups in one call)
# ----------------------------------------------------------------------------
def bayesian_conv2d_forward(x, weight, bias, *, stride=1, padding=0,
                            dilation=1, groups=1, compute_dtype=None):
    sh, sw = _pair(stride)
    ph, pw = _pair(padding)
    dh, dw = _pair(dilation)
    N, C_in, H, W = x.shape
    C_out, C_in_g, KH, KW = weight.shape
    G = groups
    assert C_in == C_in_g * G and C_out % G == 0
    C_out_g = C_out // G

    Hp, Wp = H + 2 * ph, W + 2 * pw
    H_out = (Hp - dh * (KH - 1) - 1) // sh + 1
    W_out = (Wp - dw * (KW - 1) - 1) // sw + 1
    H_dense = Hp - dh * (KH - 1)                 # dense (stride-1) rows
    L_dense = H_dense * Wp                       # lane width of kernel output
    L_flat = Hp * Wp + (KW - 1) * dw             # flat padded image (+ tail)

    # --- layout plumbing (cheap XLA reshapes/transposes, done once) ---------
    xg = x.reshape(N, G, C_in_g, H * W)
    wg = (weight.reshape(G, C_out_g, C_in_g, KH, KW)
                .transpose(0, 3, 4, 1, 2)        # (G, KH, KW, C_out_g, C_in_g)
                .reshape(G, KH * KW, C_out_g, C_in_g))
    bg = bias.reshape(G, C_out_g, 1).astype(jnp.float32)

    kernel = functools.partial(
        _conv2d_dense_kernel, H=H, W=W, Wp=Wp, ph=ph, pw=pw,
        KH=KH, KW=KW, dh=dh, dw=dw, L_dense=L_dense,
        compute_dtype=compute_dtype)

    out = pl.pallas_call(
        kernel,
        out_shape=jax.ShapeDtypeStruct((N, G, C_out_g, L_dense), x.dtype),
        grid_spec=pltpu.PrefetchScalarGridSpec(
            num_scalar_prefetch=0,
            grid=(G, N),
            in_specs=[
                pl.BlockSpec((1, 1, C_in_g, H * W), lambda g, n: (n, g, 0, 0)),
                pl.BlockSpec((1, KH * KW, C_out_g, C_in_g),
                             lambda g, n: (g, 0, 0, 0)),
                pl.BlockSpec((1, C_out_g, 1), lambda g, n: (g, 0, 0)),
            ],
            out_specs=pl.BlockSpec((1, 1, C_out_g, L_dense),
                                   lambda g, n: (n, g, 0, 0)),
            scratch_shapes=[pltpu.VMEM((C_in_g, L_flat), x.dtype)],
        ),
        compiler_params=pltpu.CompilerParams(
            dimension_semantics=("parallel", "parallel"),
            vmem_limit_bytes=32 * 1024 * 1024,
        ),
    )(xg, wg, bg)

    # (N, G, C_out_g, H_dense*Wp) -> NCHW dense grid -> stride/crop selection
    out = out.reshape(N, C_out, H_dense, Wp)
    out = out[:, :, :(H_out - 1) * sh + 1:sh, :(W_out - 1) * sw + 1:sw]
    return out


# ----------------------------------------------------------------------------
# Bayesian parameter init + Gaussian weight sampling (plain-JAX glue)
# ----------------------------------------------------------------------------
def init_bayesian_conv2d_params(key, in_channels, out_channels, kernel_size,
                                groups=1, ratio=0.25):
    kh, kw = _pair(kernel_size)
    receptive_field = kh * kw
    fan_out = out_channels * receptive_field
    total_var = 2.0 / fan_out
    noise_var = total_var * ratio
    mu_var = total_var - noise_var
    noise_std, mu_std = math.sqrt(noise_var), math.sqrt(mu_var)
    bound = math.sqrt(3.0) * mu_std
    rho_init = math.log(math.exp(noise_std) - 1.0)

    weight_mu = jax.random.uniform(
        key, (out_channels, in_channels // groups, kh, kw),
        jnp.float32, minval=-bound, maxval=bound)
    bias = jnp.zeros((out_channels,), jnp.float32)            # uniform_(0, 0)
    weight_rho = jnp.full((out_channels, 1, 1, 1), rho_init, jnp.float32)
    return weight_mu, weight_rho, bias


def _sample_weight(key, weight_mu, weight_rho):
    sigma = jnp.log1p(jnp.exp(weight_rho))                    # softplus
    eps = jax.random.normal(key, weight_mu.shape, weight_mu.dtype)
    return weight_mu + sigma * eps


def bayesian_conv2d(x, weight_mu, weight_rho, bias, *, sample=False, key=None,
                    stride=1, padding=0, dilation=1, groups=1,
                    compute_dtype=None):
    w = _sample_weight(key, weight_mu, weight_rho) if sample else weight_mu
    return bayesian_conv2d_forward(x, w, bias, stride=stride, padding=padding,
                                   dilation=dilation, groups=groups,
                                   compute_dtype=compute_dtype)


# ----------------------------------------------------------------------------
if __name__ == "__main__":
    key = jax.random.PRNGKey(0)
    k_w, k_x, k_b = jax.random.split(key, 3)

    # BayesianConv2D(4, 8, kernel_size=3, padding=1) on input (2, 4, 16, 16)
    batch, in_ch, out_ch, ksize, H, W = 2, 4, 8, 3, 16, 16
    stride, padding, dilation, groups = 1, 1, 1, 1

    weight_mu, weight_rho, bias = init_bayesian_conv2d_params(
        k_w, in_ch, out_ch, ksize, groups=groups, ratio=0.25)
    x = jax.random.normal(k_x, (batch, in_ch, H, W), jnp.float32)

    out = bayesian_conv2d(x, weight_mu, weight_rho, bias, sample=False,
                          stride=stride, padding=padding,
                          dilation=dilation, groups=groups)
    out = jax.block_until_ready(out)

    ref = jax.lax.conv_general_dilated(
        x, weight_mu, window_strides=(stride, stride),
        padding=[(padding, padding), (padding, padding)],
        rhs_dilation=(dilation, dilation),
        dimension_numbers=("NCHW", "OIHW", "NCHW"),
        feature_group_count=groups) + bias[None, :, None, None]
    assert out.shape == ref.shape, (out.shape, ref.shape)
    np.testing.assert_allclose(np.asarray(out), np.asarray(ref),
                               rtol=1e-4, atol=1e-4)

    # Grouped conv goes through the same single pallas_call (group grid axis).
    groups2, padding2 = 2, 0
    wmu2, wrho2, _ = init_bayesian_conv2d_params(k_w, in_ch, out_ch, ksize,
                                                 groups=groups2, ratio=0.25)
    b2 = jax.random.normal(k_b, (out_ch,), jnp.float32)
    out2 = jax.block_until_ready(bayesian_conv2d(
        x, wmu2, wrho2, b2, sample=False, stride=1, padding=padding2,
        dilation=1, groups=groups2))
    ref2 = jax.lax.conv_general_dilated(
        x, wmu2, window_strides=(1, 1),
        padding=[(padding2, padding2), (padding2, padding2)],
        rhs_dilation=(1, 1), dimension_numbers=("NCHW", "OIHW", "NCHW"),
        feature_group_count=groups2) + b2[None, :, None, None]
    np.testing.assert_allclose(np.asarray(out2), np.asarray(ref2),
                               rtol=1e-4, atol=1e-4)

    print("KERNEL_OK")
</pallas_src>

<mosaic_0001>
module attributes {stable_mosaic.version = 11 : i64} {
  func.func @_conv2d_dense_kernel(%arg0: i32, %arg1: i32, %arg2: memref<1x1x4x256xf32, #tpu.memory_space<vmem>>, %arg3: memref<1x9x8x4xf32, #tpu.memory_space<vmem>>, %arg4: memref<1x8x1xf32, #tpu.memory_space<vmem>>, %arg5: memref<1x1x8x288xf32, #tpu.memory_space<vmem>>, %arg6: memref<4x326xf32, #tpu.memory_space<vmem>>) attributes {dimension_semantics = [#tpu.dimension_semantics<parallel>, #tpu.dimension_semantics<parallel>], iteration_bounds = array<i64: 1, 2>, scalar_prefetch = 0 : i64, scratch_operands = 1 : i64, tpu.core_type = #tpu.core_type<tc>, window_params = [{transform_indices = @transform_0, window_bounds = array<i64: 1, 1, 4, 256>}, {transform_indices = @transform_1, window_bounds = array<i64: 1, 9, 8, 4>}, {transform_indices = @transform_2, window_bounds = array<i64: 1, 8, 1>}, {transform_indices = @transform_3, window_bounds = array<i64: 1, 1, 8, 288>}]} {
    %c0 = arith.constant 0 : index
    %c0_0 = arith.constant 0 : index
    %c0_1 = arith.constant 0 : index
    %c0_2 = arith.constant 0 : index
    %0 = vector.load %arg2[%c0, %c0_0, %c0_1, %c0_2] : memref<1x1x4x256xf32, #tpu.memory_space<vmem>>, vector<1x1x4x256xf32>
    %1 = vector.shape_cast %0 : vector<1x1x4x256xf32> to vector<4x256xf32>
    %cst = arith.constant 0.000000e+00 : f32
    %2 = vector.broadcast %cst : f32 to vector<4x326xf32>
    %c0_3 = arith.constant 0 : index
    %c0_4 = arith.constant 0 : index
    %3 = vector.load %arg6[%c0_3, %c0_4] : memref<4x326xf32, #tpu.memory_space<vmem>>, vector<4x326xf32>
    tpu.vector_store %arg6[%c0_3, %c0_4], %2 {strides = array<i32>} : memref<4x326xf32, #tpu.memory_space<vmem>>, vector<4x326xf32>,
    %4 = vector.extract_strided_slice %1 {offsets = [0, 0], sizes = [4, 16], strides = [1, 1]} : vector<4x256xf32> to vector<4x16xf32>
    %c0_5 = arith.constant 0 : index
    %c19 = arith.constant 19 : index
    %5 = vector.load %arg6[%c0_5, %c19] : memref<4x326xf32, #tpu.memory_space<vmem>>, vector<4x16xf32>
    tpu.vector_store %arg6[%c0_5, %c19], %4 {strides = array<i32>} : memref<4x326xf32, #tpu.memory_space<vmem>>, vector<4x16xf32>,
    %6 = vector.extract_strided_slice %1 {offsets = [0, 16], sizes = [4, 16], strides = [1, 1]} : vector<4x256xf32> to vector<4x16xf32>
    %c0_6 = arith.constant 0 : index
    %c37 = arith.constant 37 : index
    %7 = vector.load %arg6[%c0_6, %c37] : memref<4x326xf32, #tpu.memory_space<vmem>>, vector<4x16xf32>
    tpu.vector_store %arg6[%c0_6, %c37], %6 {strides = array<i32>} : memref<4x326xf32, #tpu.memory_space<vmem>>, vector<4x16xf32>,
    %8 = vector.extract_strided_slice %1 {offsets = [0, 32], sizes = [4, 16], strides = [1, 1]} : vector<4x256xf32> to vector<4x16xf32>
    %c0_7 = arith.constant 0 : index
    %c55 = arith.constant 55 : index
    %9 = vector.load %arg6[%c0_7, %c55] : memref<4x326xf32, #tpu.memory_space<vmem>>, vector<4x16xf32>
    tpu.vector_store %arg6[%c0_7, %c55], %8 {strides = array<i32>} : memref<4x326xf32, #tpu.memory_space<vmem>>, vector<4x16xf32>,
    %10 = vector.extract_strided_slice %1 {offsets = [0, 48], sizes = [4, 16], strides = [1, 1]} : vector<4x256xf32> to vector<4x16xf32>
    %c0_8 = arith.constant 0 : index
    %c73 = arith.constant 73 : index
    %11 = vector.load %arg6[%c0_8, %c73] : memref<4x326xf32, #tpu.memory_space<vmem>>, vector<4x16xf32>
    tpu.vector_store %arg6[%c0_8, %c73], %10 {strides = array<i32>} : memref<4x326xf32, #tpu.memory_space<vmem>>, vector<4x16xf32>,
    %12 = vector.extract_strided_slice %1 {offsets = [0, 64], sizes = [4, 16], strides = [1, 1]} : vector<4x256xf32> to vector<4x16xf32>
    %c0_9 = arith.constant 0 : index
    %c91 = arith.constant 91 : index
    %13 = vector.load %arg6[%c0_9, %c91] : memref<4x326xf32, #tpu.memory_space<vmem>>, vector<4x16xf32>
    tpu.vector_store %arg6[%c0_9, %c91], %12 {strides = array<i32>} : memref<4x326xf32, #tpu.memory_space<vmem>>, vector<4x16xf32>,
    %14 = vector.extract_strided_slice %1 {offsets = [0, 80], sizes = [4, 16], strides = [1, 1]} : vector<4x256xf32> to vector<4x16xf32>
    %c0_10 = arith.constant 0 : index
    %c109 = arith.constant 109 : index
    %15 = vector.load %arg6[%c0_10, %c109] : memref<4x326xf32, #tpu.memory_space<vmem>>, vector<4x16xf32>
    tpu.vector_store %arg6[%c0_10, %c109], %14 {strides = array<i32>} : memref<4x326xf32, #tpu.memory_space<vmem>>, vector<4x16xf32>,
    %16 = vector.extract_strided_slice %1 {offsets = [0, 96], sizes = [4, 16], strides = [1, 1]} : vector<4x256xf32> to vector<4x16xf32>
    %c0_11 = arith.constant 0 : index
    %c127 = arith.constant 127 : index
    %17 = vector.load %arg6[%c0_11, %c127] : memref<4x326xf32, #tpu.memory_space<vmem>>, vector<4x16xf32>
    tpu.vector_store %arg6[%c0_11, %c127], %16 {strides = array<i32>} : memref<4x326xf32, #tpu.memory_space<vmem>>, vector<4x16xf32>,
    %18 = vector.extract_strided_slice %1 {offsets = [0, 112], sizes = [4, 16], strides = [1, 1]} : vector<4x256xf32> to vector<4x16xf32>
    %c0_12 = arith.constant 0 : index
    %c145 = arith.constant 145 : index
    %19 = vector.load %arg6[%c0_12, %c145] : memref<4x326xf32, #tpu.memory_space<vmem>>, vector<4x16xf32>
    tpu.vector_store %arg6[%c0_12, %c145], %18 {strides = array<i32>} : memref<4x326xf32, #tpu.memory_space<vmem>>, vector<4x16xf32>,
    %20 = vector.extract_strided_slice %1 {offsets = [0, 128], sizes = [4, 16], strides = [1, 1]} : vector<4x256xf32> to vector<4x16xf32>
    %c0_13 = arith.constant 0 : index
    %c163 = arith.constant 163 : index
    %21 = vector.load %arg6[%c0_13, %c163] : memref<4x326xf32, #tpu.memory_space<vmem>>, vector<4x16xf32>
    tpu.vector_store %arg6[%c0_13, %c163], %20 {strides = array<i32>} : memref<4x326xf32, #tpu.memory_space<vmem>>, vector<4x16xf32>,
    %22 = vector.extract_strided_slice %1 {offsets = [0, 144], sizes = [4, 16], strides = [1, 1]} : vector<4x256xf32> to vector<4x16xf32>
    %c0_14 = arith.constant 0 : index
    %c181 = arith.constant 181 : index
    %23 = vector.load %arg6[%c0_14, %c181] : memref<4x326xf32, #tpu.memory_space<vmem>>, vector<4x16xf32>
    tpu.vector_store %arg6[%c0_14, %c181], %22 {strides = array<i32>} : memref<4x326xf32, #tpu.memory_space<vmem>>, vector<4x16xf32>,
    %24 = vector.extract_strided_slice %1 {offsets = [0, 160], sizes = [4, 16], strides = [1, 1]} : vector<4x256xf32> to vector<4x16xf32>
    %c0_15 = arith.constant 0 : index
    %c199 = arith.constant 199 : index
    %25 = vector.load %arg6[%c0_15, %c199] : memref<4x326xf32, #tpu.memory_space<vmem>>, vector<4x16xf32>
    tpu.vector_store %arg6[%c0_15, %c199], %24 {strides = array<i32>} : memref<4x326xf32, #tpu.memory_space<vmem>>, vector<4x16xf32>,
    %26 = vector.extract_strided_slice %1 {offsets = [0, 176], sizes = [4, 16], strides = [1, 1]} : vector<4x256xf32> to vector<4x16xf32>
    %c0_16 = arith.constant 0 : index
    %c217 = arith.constant 217 : index
    %27 = vector.load %arg6[%c0_16, %c217] : memref<4x326xf32, #tpu.memory_space<vmem>>, vector<4x16xf32>
    tpu.vector_store %arg6[%c0_16, %c217], %26 {strides = array<i32>} : memref<4x326xf32, #tpu.memory_space<vmem>>, vector<4x16xf32>,
    %28 = vector.extract_strided_slice %1 {offsets = [0, 192], sizes = [4, 16], strides = [1, 1]} : vector<4x256xf32> to vector<4x16xf32>
    %c0_17 = arith.constant 0 : index
    %c235 = arith.constant 235 : index
    %29 = vector.load %arg6[%c0_17, %c235] : memref<4x326xf32, #tpu.memory_space<vmem>>, vector<4x16xf32>
    tpu.vector_store %arg6[%c0_17, %c235], %28 {strides = array<i32>} : memref<4x326xf32, #tpu.memory_space<vmem>>, vector<4x16xf32>,
    %30 = vector.extract_strided_slice %1 {offsets = [0, 208], sizes = [4, 16], strides = [1, 1]} : vector<4x256xf32> to vector<4x16xf32>
    %c0_18 = arith.constant 0 : index
    %c253 = arith.constant 253 : index
    %31 = vector.load %arg6[%c0_18, %c253] : memref<4x326xf32, #tpu.memory_space<vmem>>, vector<4x16xf32>
    tpu.vector_store %arg6[%c0_18, %c253], %30 {strides = array<i32>} : memref<4x326xf32, #tpu.memory_space<vmem>>, vector<4x16xf32>,
    %32 = vector.extract_strided_slice %1 {offsets = [0, 224], sizes = [4, 16], strides = [1, 1]} : vector<4x256xf32> to vector<4x16xf32>
    %c0_19 = arith.constant 0 : index
    %c271 = arith.constant 271 : index
    %33 = vector.load %arg6[%c0_19, %c271] : memref<4x326xf32, #tpu.memory_space<vmem>>, vector<4x16xf32>
    tpu.vector_store %arg6[%c0_19, %c271], %32 {strides = array<i32>} : memref<4x326xf32, #tpu.memory_space<vmem>>, vector<4x16xf32>,
    %34 = vector.extract_strided_slice %1 {offsets = [0, 240], sizes = [4, 16], strides = [1, 1]} : vector<4x256xf32> to vector<4x16xf32>
    %c0_20 = arith.constant 0 : index
    %c289 = arith.constant 289 : index
    %35 = vector.load %arg6[%c0_20, %c289] : memref<4x326xf32, #tpu.memory_space<vmem>>, vector<4x16xf32>
    tpu.vector_store %arg6[%c0_20, %c289], %34 {strides = array<i32>} : memref<4x326xf32, #tpu.memory_space<vmem>>, vector<4x16xf32>,
    %cst_21 = arith.constant 0.000000e+00 : f32
    %36 = vector.broadcast %cst_21 : f32 to vector<8x288xf32>
    %c0_22 = arith.constant 0 : index
    %c0_23 = arith.constant 0 : index
    %37 = vector.load %arg6[%c0_22, %c0_23] : memref<4x326xf32, #tpu.memory_space<vmem>>, vector<4x288xf32>
    %c0_24 = arith.constant 0 : index
    %c0_25 = arith.constant 0 : index
    %c0_26 = arith.constant 0 : index
    %c0_27 = arith.constant 0 : index
    %38 = vector.load %arg3[%c0_24, %c0_25, %c0_26, %c0_27] : memref<1x9x8x4xf32, #tpu.memory_space<vmem>>, vector<1x1x8x4xf32>
    %39 = vector.shape_cast %38 : vector<1x1x8x4xf32> to vector<8x4xf32>
    %cst_28 = arith.constant dense<0.000000e+00> : vector<8x288xf32>
    %40 = tpu.matmul %39, %37, %cst_28 {dimension_numbers = #tpu.dot_dimension_numbers<[1], [0], [0], [1], [0, 0, 1, 1], [], []>} : vector<8x4xf32>, vector<4x288xf32>, vector<8x288xf32> -> vector<8x288xf32>
    %41 = arith.addf %36, %40 : vector<8x288xf32>
    %c0_29 = arith.constant 0 : index
    %c1 = arith.constant 1 : index
    %42 = vector.load %arg6[%c0_29, %c1] : memref<4x326xf32, #tpu.memory_space<vmem>>, vector<4x288xf32>
    %c0_30 = arith.constant 0 : index
    %c1_31 = arith.constant 1 : index
    %c0_32 = arith.constant 0 : index
    %c0_33 = arith.constant 0 : index
    %43 = vector.load %arg3[%c0_30, %c1_31, %c0_32, %c0_33] : memref<1x9x8x4xf32, #tpu.memory_space<vmem>>, vector<1x1x8x4xf32>
    %44 = vector.shape_cast %43 : vector<1x1x8x4xf32> to vector<8x4xf32>
    %cst_34 = arith.constant dense<0.000000e+00> : vector<8x288xf32>
    %45 = tpu.matmul %44, %42, %cst_34 {dimension_numbers = #tpu.dot_dimension_numbers<[1], [0], [0], [1], [0, 0, 1, 1], [], []>} : vector<8x4xf32>, vector<4x288xf32>, vector<8x288xf32> -> vector<8x288xf32>
    %46 = arith.addf %41, %45 : vector<8x288xf32>
    %c0_35 = arith.constant 0 : index
    %c2 = arith.constant 2 : index
    %47 = vector.load %arg6[%c0_35, %c2] : memref<4x326xf32, #tpu.memory_space<vmem>>, vector<4x288xf32>
    %c0_36 = arith.constant 0 : index
    %c2_37 = arith.constant 2 : index
    %c0_38 = arith.constant 0 : index
    %c0_39 = arith.constant 0 : index
    %48 = vector.load %arg3[%c0_36, %c2_37, %c0_38, %c0_39] : memref<1x9x8x4xf32, #tpu.memory_space<vmem>>, vector<1x1x8x4xf32>
    %49 = vector.shape_cast %48 : vector<1x1x8x4xf32> to vector<8x4xf32>
    %cst_40 = arith.constant dense<0.000000e+00> : vector<8x288xf32>
    %50 = tpu.matmul %49, %47, %cst_40 {dimension_numbers = #tpu.dot_dimension_numbers<[1], [0], [0], [1], [0, 0, 1, 1], [], []>} : vector<8x4xf32>, vector<4x288xf32>, vector<8x288xf32> -> vector<8x288xf32>
    %51 = arith.addf %46, %50 : vector<8x288xf32>
    %c0_41 = arith.constant 0 : index
    %c18 = arith.constant 18 : index
    %52 = vector.load %arg6[%c0_41, %c18] : memref<4x326xf32, #tpu.memory_space<vmem>>, vector<4x288xf32>
    %c0_42 = arith.constant 0 : index
    %c3 = arith.constant 3 : index
    %c0_43 = arith.constant 0 : index
    %c0_44 = arith.constant 0 : index
    %53 = vector.load %arg3[%c0_42, %c3, %c0_43, %c0_44] : memref<1x9x8x4xf32, #tpu.memory_space<vmem>>, vector<1x1x8x4xf32>
    %54 = vector.shape_cast %53 : vector<1x1x8x4xf32> to vector<8x4xf32>
    %cst_45 = arith.constant dense<0.000000e+00> : vector<8x288xf32>
    %55 = tpu.matmul %54, %52, %cst_45 {dimension_numbers = #tpu.dot_dimension_numbers<[1], [0], [0], [1], [0, 0, 1, 1], [], []>} : vector<8x4xf32>, vector<4x288xf32>, vector<8x288xf32> -> vector<8x288xf32>
    %56 = arith.addf %51, %55 : vector<8x288xf32>
    %c0_46 = arith.constant 0 : index
    %c19_47 = arith.constant 19 : index
    %57 = vector.load %arg6[%c0_46, %c19_47] : memref<4x326xf32, #tpu.memory_space<vmem>>, vector<4x288xf32>
    %c0_48 = arith.constant 0 : index
    %c4 = arith.constant 4 : index
    %c0_49 = arith.constant 0 : index
    %c0_50 = arith.constant 0 : index
    %58 = vector.load %arg3[%c0_48, %c4, %c0_49, %c0_50] : memref<1x9x8x4xf32, #tpu.memory_space<vmem>>, vector<1x1x8x4xf32>
    %59 = vector.shape_cast %58 : vector<1x1x8x4xf32> to vector<8x4xf32>
    %cst_51 = arith.constant dense<0.000000e+00> : vector<8x288xf32>
    %60 = tpu.matmul %59, %57, %cst_51 {dimension_numbers = #tpu.dot_dimension_numbers<[1], [0], [0], [1], [0, 0, 1, 1], [], []>} : vector<8x4xf32>, vector<4x288xf32>, vector<8x288xf32> -> vector<8x288xf32>
    %61 = arith.addf %56, %60 : vector<8x288xf32>
    %c0_52 = arith.constant 0 : index
    %c20 = arith.constant 20 : index
    %62 = vector.load %arg6[%c0_52, %c20] : memref<4x326xf32, #tpu.memory_space<vmem>>, vector<4x288xf32>
    %c0_53 = arith.constant 0 : index
    %c5 = arith.constant 5 : index
    %c0_54 = arith.constant 0 : index
    %c0_55 = arith.constant 0 : index
    %63 = vector.load %arg3[%c0_53, %c5, %c0_54, %c0_55] : memref<1x9x8x4xf32, #tpu.memory_space<vmem>>, vector<1x1x8x4xf32>
    %64 = vector.shape_cast %63 : vector<1x1x8x4xf32> to vector<8x4xf32>
    %cst_56 = arith.constant dense<0.000000e+00> : vector<8x288xf32>
    %65 = tpu.matmul %64, %62, %cst_56 {dimension_numbers = #tpu.dot_dimension_numbers<[1], [0], [0], [1], [0, 0, 1, 1], [], []>} : vector<8x4xf32>, vector<4x288xf32>, vector<8x288xf32> -> vector<8x288xf32>
    %66 = arith.addf %61, %65 : vector<8x288xf32>
    %c0_57 = arith.constant 0 : index
    %c36 = arith.constant 36 : index
    %67 = vector.load %arg6[%c0_57, %c36] : memref<4x326xf32, #tpu.memory_space<vmem>>, vector<4x288xf32>
    %c0_58 = arith.constant 0 : index
    %c6 = arith.constant 6 : index
    %c0_59 = arith.constant 0 : index
    %c0_60 = arith.constant 0 : index
    %68 = vector.load %arg3[%c0_58, %c6, %c0_59, %c0_60] : memref<1x9x8x4xf32, #tpu.memory_space<vmem>>, vector<1x1x8x4xf32>
    %69 = vector.shape_cast %68 : vector<1x1x8x4xf32> to vector<8x4xf32>
    %cst_61 = arith.constant dense<0.000000e+00> : vector<8x288xf32>
    %70 = tpu.matmul %69, %67, %cst_61 {dimension_numbers = #tpu.dot_dimension_numbers<[1], [0], [0], [1], [0, 0, 1, 1], [], []>} : vector<8x4xf32>, vector<4x288xf32>, vector<8x288xf32> -> vector<8x288xf32>
    %71 = arith.addf %66, %70 : vector<8x288xf32>
    %c0_62 = arith.constant 0 : index
    %c37_63 = arith.constant 37 : index
    %72 = vector.load %arg6[%c0_62, %c37_63] : memref<4x326xf32, #tpu.memory_space<vmem>>, vector<4x288xf32>
    %c0_64 = arith.constant 0 : index
    %c7 = arith.constant 7 : index
    %c0_65 = arith.constant 0 : index
    %c0_66 = arith.constant 0 : index
    %73 = vector.load %arg3[%c0_64, %c7, %c0_65, %c0_66] : memref<1x9x8x4xf32, #tpu.memory_space<vmem>>, vector<1x1x8x4xf32>
    %74 = vector.shape_cast %73 : vector<1x1x8x4xf32> to vector<8x4xf32>
    %cst_67 = arith.constant dense<0.000000e+00> : vector<8x288xf32>
    %75 = tpu.matmul %74, %72, %cst_67 {dimension_numbers = #tpu.dot_dimension_numbers<[1], [0], [0], [1], [0, 0, 1, 1], [], []>} : vector<8x4xf32>, vector<4x288xf32>, vector<8x288xf32> -> vector<8x288xf32>
    %76 = arith.addf %71, %75 : vector<8x288xf32>
    %c0_68 = arith.constant 0 : index
    %c38 = arith.constant 38 : index
    %77 = vector.load %arg6[%c0_68, %c38] : memref<4x326xf32, #tpu.memory_space<vmem>>, vector<4x288xf32>
    %c0_69 = arith.constant 0 : index
    %c8 = arith.constant 8 : index
    %c0_70 = arith.constant 0 : index
    %c0_71 = arith.constant 0 : index
    %78 = vector.load %arg3[%c0_69, %c8, %c0_70, %c0_71] : memref<1x9x8x4xf32, #tpu.memory_space<vmem>>, vector<1x1x8x4xf32>
    %79 = vector.shape_cast %78 : vector<1x1x8x4xf32> to vector<8x4xf32>
    %cst_72 = arith.constant dense<0.000000e+00> : vector<8x288xf32>
    %80 = tpu.matmul %79, %77, %cst_72 {dimension_numbers = #tpu.dot_dimension_numbers<[1], [0], [0], [1], [0, 0, 1, 1], [], []>} : vector<8x4xf32>, vector<4x288xf32>, vector<8x288xf32> -> vector<8x288xf32>
    %81 = arith.addf %76, %80 : vector<8x288xf32>
    %c0_73 = arith.constant 0 : index
    %c0_74 = arith.constant 0 : index
    %c0_75 = arith.constant 0 : index
    %82 = vector.load %arg4[%c0_73, %c0_74, %c0_75] : memref<1x8x1xf32, #tpu.memory_space<vmem>>, vector<1x8x1xf32>
    %83 = vector.shape_cast %82 : vector<1x8x1xf32> to vector<8x1xf32>
    %84 = vector.broadcast %83 : vector<8x1xf32> to vector<8x288xf32>
    %85 = arith.addf %81, %84 : vector<8x288xf32>
    %c0_76 = arith.constant 0 : index
    %c0_77 = arith.constant 0 : index
    %c0_78 = arith.constant 0 : index
    %c0_79 = arith.constant 0 : index
    %86 = vector.load %arg5[%c0_76, %c0_77, %c0_78, %c0_79] : memref<1x1x8x288xf32, #tpu.memory_space<vmem>>, vector<1x1x8x288xf32>
    %87 = vector.shape_cast %86 : vector<1x1x8x288xf32> to vector<8x288xf32>
    %88 = vector.shape_cast %85 : vector<8x288xf32> to vector<1x1x8x288xf32>
    tpu.vector_store %arg5[%c0_76, %c0_77, %c0_78, %c0_79], %88 {strides = array<i32>} : memref<1x1x8x288xf32, #tpu.memory_space<vmem>>, vector<1x1x8x288xf32>,
    return
  }
  func.func @transform_0(%arg0: i32, %arg1: i32) -> (i32, i32, i32, i32) {
    %c0_i32 = arith.constant 0 : i32
    %c0_i32_0 = arith.constant 0 : i32
    %c0_i32_1 = arith.constant 0 : i32
    return %arg1, %arg0, %c0_i32, %c0_i32_0 : i32, i32, i32, i32
  }
  func.func @transform_1(%arg0: i32, %arg1: i32) -> (i32, i32, i32, i32) {
    %c0_i32 = arith.constant 0 : i32
    %c0_i32_0 = arith.constant 0 : i32
    %c0_i32_1 = arith.constant 0 : i32
    %c0_i32_2 = arith.constant 0 : i32
    return %arg0, %c0_i32, %c0_i32_0, %c0_i32_1 : i32, i32, i32, i32
  }
  func.func @transform_2(%arg0: i32, %arg1: i32) -> (i32, i32, i32) {
    %c0_i32 = arith.constant 0 : i32
    %c0_i32_0 = arith.constant 0 : i32
    %c0_i32_1 = arith.constant 0 : i32
    return %arg0, %c0_i32, %c0_i32_0 : i32, i32, i32
  }
  func.func @transform_3(%arg0: i32, %arg1: i32) -> (i32, i32, i32, i32) {
    %c0_i32 = arith.constant 0 : i32
    %c0_i32_0 = arith.constant 0 : i32
    %c0_i32_1 = arith.constant 0 : i32
    return %arg1, %arg0, %c0_i32, %c0_i32_0 : i32, i32, i32, i32
  }
}

</mosaic_0001>

<bundles_post_ra>
// kernel: tpu_custom_call.1
= control target key start
LH: loop header
LB: loop body
LE: loop exit
PB: predicated region body
PF: predicated region fallthrough
CT: control target
= control target key end

     0   :  { %8 = vsyncpa [#allocation4], 0  ;;  %s2605_s0 = inlined_call_operand.vmem [shape: f32[2,1,4,256], index: 0, kind: input, shape index: {}]   ;;  %s2606_s1 = inlined_call_operand.vmem [shape: f32[1,9,8,4], index: 1, kind: input, shape index: {}]   ;;  %s2607_s2 = inlined_call_operand.vmem [shape: f32[1,8,1], index: 2, kind: input, shape index: {}]   ;;  %s2608_s3 = inlined_call_operand.hbm [shape: f32[2,1,8,288], index: 3, kind: output, shape index: {}]  }
   0x1   :  { %10 = vsyncpa [#allocation4 + $0x1], 0  ;;  %s2346_s12 = smov 0   ;;  %s2348_s13 = smov 0  }
   0x2   :  { %s2350_s14 = smov 0   ;;  %s2352_s15 = smov 0  }
   0x3   :  { %s2354_s16 = smov 0   ;;  %s2356_s17 = smov 0  }
   0x4 LB: > { %s1987_s18 = sadd.s32 4294967295, %s2296_s17   ;;  %s1988_s19 = sadd.s32 4294967294, %s2296_s17   ;;  %s2296_s17 = sphi %s2356_s17, %s16_s17   ;;  %s2292_s16 = sphi %s2354_s16, %s2615_s16   ;;  %s2288_s15 = sphi %s2352_s15, %s2614_s15   ;;  %s2284_s14 = sphi %s2350_s14, %s2613_s14   ;;  %s2280_s13 = sphi %s2348_s13, %s2612_s13   ;;  %s2276_s12 = sphi %s2346_s12, %s2611_s12  }
   0x5   : > { %s25_s20 = sadd.s32 1, %s2292_s16  ;;  %s117_s21 = sadd.s32 1, %s2284_s14 }
   0x6   : > { %p26_p0 = scmp.ge.s32.totalorder %s25_s20, 2  ;;  %p127_p1 = scmp.ne.s32.totalorder %s2284_s14, %s2280_s13 }
   0x7   : > { %p128_p2 = scmp.eq.s32.totalorder %s1987_s18, 1  ;;  %p133_p3 = scmp.ne.s32.totalorder %s2280_s13, %s2276_s12 }
   0x8   : > { %s2617_s20 = smov (%p26_p0, %s25_s20), 0  ;;  %p134_p5 = scmp.eq.s32.totalorder %s1988_s19, 1 }
   0x9   : > { %p2386_p4 = por %p128_p2, %p127_p1  ;;  %s112_s23 = ssub.s32 %s2292_s16, %s2617_s20 }
   0xa   : > { %p1993_p6 = scmp.ge.s32.totalorder %s2296_s17, 1  ;;  %p115_p7 = scmp.eq.s32.totalorder %s112_s23, 0 }
   0xb   : > { %p2393_p8 = por %p134_p5, %p133_p3  ;;  %p179_p9 = scmp.lt.s32.totalorder %s2296_s17, 3 }
   0xc   : > { %s2399_s25 = scalar_select %p115_p7, %s2284_s14, %s117_s21  }
   0xd   : > { %p180_p10 = pnand %p1993_p6, %p179_p9 }
   0xe   : > { %p216_p11 = scmp.lt.s32.totalorder (!%p180_p10), %s2288_s15, 1  ;;  %v2298_v0 = vmov (!%p180_p10), 0.0   ;;  %s2299_s4 = smov (!%p180_p10), 23   ;;  %vm236_vm0 = vcmask (!%p180_p10), 568320   ;;  %vm242_vm1 = vcmask (!%p180_p10), 281752   ;;  %vm247_vm2 = vcmask (!%p180_p10), 429352  }
   0xf   : > { %183 = sbr.rel (%p180_p10) target bundleno = 594 (0x252), region = 32  ;;  %235 = vst [vmem:[#allocation2] sm:$0xff] (!%p180_p10), %v2298_v0  ;;  %2071 = vmatprep.subr.mxu1 (!%p180_p10), %v2298_v0  ;;  %438 = vmatprep.mubr.f32.mxu0 (!%p180_p10), %v2298_v0  ;;  %s2300_s5 = smov (!%p180_p10), 19   ;;  %237 = vst.msk [vmem:[#allocation2 + $0x8] sm:$0xf] (!%p180_p10), %vm236_vm0, %v2298_v0  ;;  %vm252_vm3 = vcmask (!%p180_p10), 576952  }
  0x10   : > { %s2301_s6 = smov (!%p180_p10), 25   ;;  %s2302_s7 = smov (!%p180_p10), 21   ;;  %vm257_vm4 = vcmask (!%p180_p10), 724552   ;;  %vm262_vm5 = vcmask (!%p180_p10), 872152   ;;  %vm275_vm6 = vcmask (!%p180_p10), 1044472   ;;  %vm276_vm7 = vcmask (!%p180_p10), 121860  }
  0x11   : > { %s2303_s8 = smov (!%p180_p10), 27   ;;  %s2304_s9 = smov (!%p180_p10), 31   ;;  %vm272_vm8 = vcmask (!%p180_p10), 252928   ;;  %vm267_vm9 = vcmask (!%p180_p10), 1019752   ;;  %vm277_vm10 = vmor (!%p180_p10), %vm276_vm7, %vm275_vm6  ;;  %vm287_vm11 = vcmask (!%p180_p10), 285696   ;;  %vm282_vm12 = vcmask (!%p180_p10), 265352  }
  0x12   : > { %s2305_s10 = smov (!%p180_p10), 35   ;;  %s2306_s11 = smov (!%p180_p10), 29   ;;  %vm290_vm13 = vcmask (!%p180_p10), 412952   ;;  %vm295_vm14 = vcmask (!%p180_p10), 302080   ;;  %vm298_vm15 = vcmask (!%p180_p10), 560552   ;;  %vm311_vm0 = vcmask (!%p180_p10), 334848  }
  0x13   : > { %s2307_s18 = smov (!%p180_p10), 33   ;;  %s2308_s19 = smov (!%p180_p10), 37   ;;  %vm327_vm6 = vcmask (!%p180_p10), 367616   ;;  %vm319_vm7 = vcmask (!%p180_p10), 351232   ;;  %v1848_v44 = vld [vmem:[%s2607_s2] sm:$0xff] (!%p180_p10)  ;;  %v2324_v45 = vmov (!%p180_p10), 0  }
  0x14   : > { %s2309_s21 = smov (!%p180_p10), 41   ;;  %s2310_s23 = smov (!%p180_p10), 39   ;;  %2216 = vset.pattern.permute.xlu0 (!%p180_p10), %v2324_v45  ;;  %v1996_v48 = vld [vmem:[%s2606_s1 + $0x8] sm:$0xff] (!%p180_p10)  ;;  %v348_v53 = vld [vmem:[%s2606_s1] sm:$0xff] (!%p180_p10)  ;;  %v2007_v57 = vld [vmem:[%s2606_s1 + $0x10] sm:$0xff] (!%p180_p10) }
  0x15   : > { %s2313_s28 = smov (!%p180_p10), 47   ;;  %s2314_s29 = smov (!%p180_p10), 49   ;;  %v2013_v60 = vld [vmem:[%s2606_s1 + $0x18] sm:$0xff] (!%p180_p10) }
  0x16   : > { %s217_s26 = scalar_select %p216_p11, %s2288_s15, 1 }
  0x18   : > { %s2052_s27 = sshll.u32 %s217_s26, 3  ;;  %s2311_s26 = smov 45  }
  0x19   : > { %s224_s30 = scalar_lea.vmem %s2605_s0, %s2052_s27  ;;  %s2312_s27 = smov 43  }
  0x1a   : > { %v234_v1 = vld [vmem:[%s224_s30] sm:$0xff]  ;;  %s2316_s30 = smov 127  }
  0x1b   : > { %249 = vrot.lane.b32.xlu1 %v234_v1, %s2299_s4  ;;  %239 = vrot.lane.b32.xlu0 %v234_v1, %s2300_s5  ;;  %s2317_s4 = smov 126   ;;  %s2318_s5 = smov 110  }
  0x1f   : > { %254 = vrot.lane.b32.xlu1 %v234_v1, %s2301_s6  ;;  %244 = vrot.lane.b32.xlu0 %v234_v1, %s2302_s7  ;;  %s2319_s6 = smov 109   ;;  %s2320_s7 = smov 108  }
  0x23   : > { %259 = vrot.lane.b32.xlu1 %v234_v1, %s2303_s8  ;;  %269 = vrot.lane.b32.xlu0 %v234_v1, %s2304_s9  ;;  %s2321_s8 = smov 92   ;;  %s2322_s9 = smov 91  }
  0x27   : > { %284 = vrot.lane.b32.xlu1 %v234_v1, %s2305_s10  ;;  %264 = vrot.lane.b32.xlu0 %v234_v1, %s2306_s11  ;;  %s2323_s10 = smov 90  }
  0x2b   : > { %279 = vrot.lane.b32.xlu1 %v234_v1, %s2307_s18  ;;  %292 = vrot.lane.b32.xlu0 %v234_v1, %s2308_s19 }
  0x2f   : > { %308 = vrot.lane.b32.xlu1 %v234_v1, %s2309_s21  ;;  %300 = vrot.lane.b32.xlu0 %v234_v1, %s2310_s23  ;;  %s213_s21 = sand.u32 1, %s2280_s13  }
  0x30   : > { %s2132_s23 = smul.u32 24, %s213_s21 }
  0x33   : > { %324 = vrot.lane.b32.xlu1 %v234_v1, %s2311_s26  ;;  %316 = vrot.lane.b32.xlu0 %v234_v1, %s2312_s27  ;;  %s215_s26 = scalar_lea.vmem [#allocation3], %s2132_s23  ;;  %s2133_s27 = smul.u32 384, %s2288_s15 }
  0x34   : > { %s2325_s15 = smov [#allocation3]  }
  0x37   : > { %334 = vrot.lane.b32.xlu0 %v234_v1, %s2313_s28  ;;  %340 = vrot.lane.b32.xlu1 %v234_v1, %s2314_s29  ;;  %s1878_s28 = sshll.u32 %s215_s26, 4  ;;  %s2560_s28 = int_to_ptr.vmem [resolvable:$true] %s1878_s28 }
  0x8d   : > { %v250_v2 = vpop.permute.xlu1 %249  ;;  %v240_v3 = vpop.permute.xlu0 %239 }
  0x8e   : > { %243 = vst.msk [vmem:[#allocation2] sm:$0xf] %vm242_vm1, %v240_v3  ;;  %vm303_vm1 = vcmask 318464  }
  0x91   : > { %v255_v4 = vpop.permute.xlu1 %254  ;;  %v245_v5 = vpop.permute.xlu0 %244 }
  0x92   : > { %248 = vst.msk [vmem:[#allocation2] sm:$0xf] %vm247_vm2, %v245_v5  ;;  %vm306_vm2 = vcmask 708152  }
  0x93   : > { %253 = vst.msk [vmem:[#allocation2] sm:$0xf] %vm252_vm3, %v250_v2  ;;  %vm314_vm3 = vcmask 855752   ;;  %v2019_v2 = vld [vmem:[%s2606_s1 + $0x20] sm:$0xff] }
  0x94   : > { %258 = vst.msk [vmem:[#allocation2] sm:$0xf] %vm257_vm4, %v255_v4  ;;  %vm330_vm4 = vcmask 1044456  }
  0x95   : > { %v260_v6 = vpop.permute.xlu1 %259  ;;  %v270_v7 = vpop.permute.xlu0 %269 }
  0x96   : > { %263 = vst.msk [vmem:[#allocation2] sm:$0xf] %vm262_vm5, %v260_v6  ;;  %v271_v8 = vrot.slane %v270_v7, 4  ;;  %vm331_vm5 = vcmask 105476  }
  0x98   : > { %v273_v11 = vsel %vm272_vm8, %v271_v8, %v270_v7  ;;  %vm322_vm8 = vcmask 1003352   ;;  %v2025_v8 = vld [vmem:[%s2606_s1 + $0x28] sm:$0xff] }
  0x99   : > { %v285_v9 = vpop.permute.xlu1 %284  ;;  %v265_v10 = vpop.permute.xlu0 %264 }
  0x9a   : > { %v286_v12 = vrot.slane %v285_v9, 4  ;;  %268 = vst.msk [vmem:[#allocation2] sm:$0xf] %vm267_vm9, %v265_v10  ;;  %vm332_vm9 = vmor %vm331_vm5, %vm330_vm4  ;;  %vm1354_vm4 = vcmask 752640   ;;  %vm1523_vm5 = vcmask 744448  }
  0x9b   : > { %278 = vst.msk [vmem:[#allocation2] sm:$0xff] %vm277_vm10, %v273_v11  ;;  %vm338_vm10 = vcmask 248952  }
  0x9c   : > { %v288_v15 = vsel %vm287_vm11, %v285_v9, %v286_v12  ;;  %vm2315_vm11 = vmmov 0  }
  0x9d   : > { %v280_v13 = vpop.permute.xlu1 %279  ;;  %v293_v14 = vpop.permute.xlu0 %292  ;;  %2073 = vmatprep.mubr.msk.f32.mxu1 %vm2315_vm11, %v2298_v0 }
  0x9e   : > { %283 = vst.msk [vmem:[#allocation2 + $0x4] sm:$0xf] %vm282_vm12, %v280_v13  ;;  %v294_v16 = vrot.slane %v293_v14, 4  ;;  %vm344_vm12 = vcmask 396552   ;;  %v2031_v13 = vld [vmem:[%s2606_s1 + $0x30] sm:$0xff] }
  0x9f   : > { %291 = vst.msk [vmem:[#allocation2 + $0x4] sm:$0xf] %vm290_vm13, %v288_v15  ;;  %vm367_vm13 = vcmask 1043456  }
  0xa0   : > { %v296_v17 = vsel %vm295_vm14, %v293_v14, %v294_v16  ;;  %vm360_vm14 = vcmask 1039360  }
  0xa1   : > { %299 = vst.msk [vmem:[#allocation2 + $0x4] sm:$0xf] %vm298_vm15, %v296_v17  ;;  %v309_v18 = vpop.permute.xlu1 %308  ;;  %v301_v19 = vpop.permute.xlu0 %300  ;;  %vm363_vm15 = vcmask 31744  }
  0xa2   : > { %v310_v20 = vrot.slane %v309_v18, 4  ;;  %v302_v21 = vrot.slane %v301_v19, 4 }
  0xa4   : > { %v312_v22 = vsel %vm311_vm0, %v309_v18, %v310_v20  ;;  %v304_v23 = vsel %vm303_vm1, %v301_v19, %v302_v21  ;;  %vm678_vm0 = vcmask 1031168   ;;  %vm847_vm1 = vcmask 900096   ;;  %v2037_v19 = vld [vmem:[%s2606_s1 + $0x38] sm:$0xff] }
  0xa5   : > { %307 = vst.msk [vmem:[#allocation2 + $0x4] sm:$0xf] %vm306_vm2, %v304_v23  ;;  %v325_v24 = vpop.permute.xlu1 %324  ;;  %v317_v25 = vpop.permute.xlu0 %316  ;;  %vm1016_vm2 = vcmask 891904   ;;  %v2043_v23 = vld [vmem:[%s2606_s1 + $0x40] sm:$0xff] }
  0xa6   : > { %v326_v26 = vrot.slane %v325_v24, 4  ;;  %315 = vst.msk [vmem:[#allocation2 + $0x4] sm:$0xf] %vm314_vm3, %v312_v22  ;;  %v318_v27 = vrot.slane %v317_v25, 4  ;;  %vm1185_vm3 = vcmask 883712  }
  0xa8   : > { %v328_v28 = vsel %vm327_vm6, %v325_v24, %v326_v26  ;;  %v320_v29 = vsel %vm319_vm7, %v317_v25, %v318_v27  ;;  %vm1692_vm6 = vcmask 736256   ;;  %vm1859_vm7 = vcmask 261120  }
  0xa9   : > { %323 = vst.msk [vmem:[#allocation2 + $0x4] sm:$0xf] %vm322_vm8, %v320_v29  ;;  %v335_v30 = vpop.permute.xlu0 %334  ;;  %v341_v31 = vpop.permute.xlu1 %340 }
  0xaa   : > { %333 = vst.msk [vmem:[#allocation2 + $0x4] sm:$0xff] %vm332_vm9, %v328_v28  ;;  %v336_v32 = vrot.slane %v335_v30, 4  ;;  %v342_v33 = vrot.slane %v341_v31, 4 }
  0xac   : > { %339 = vst.msk [vmem:[#allocation2 + $0x8] sm:$0xf] %vm338_vm10, %v336_v32 }
  0xad   : > { %345 = vst.msk [vmem:[#allocation2 + $0x8] sm:$0xf] %vm344_vm12, %v342_v33 }
  0xb1   : > { %v2412_v34 = vld [vmem:[#allocation2] sm:$0xff] }
  0xb2   : > { %v2416_v35 = vcombine.high %v2412_v34, %v2412_v34 }
  0xb4   : > { %356 = vrot.lane.b32.xlu0 %v2416_v35, %s2316_s30  ;;  %v347_v36 = vld [vmem:[#allocation2 + $0x8] sm:$0xf] }
  0xb5   : > { %358 = vrot.lane.b32.xlu1 %v347_v36, %s2316_s30  ;;  %v666_v37 = vld [vmem:[#allocation2 + $0x8] sm:$0xf] }
  0xb6   : > { %v835_v38 = vld [vmem:[#allocation2 + $0x8] sm:$0xf] }
  0xb7   : > { %v1004_v39 = vld [vmem:[#allocation2 + $0x8] sm:$0xf] }
  0xb8   : > { %354 = vrot.lane.b32.xlu0 %v2412_v34, %s2316_s30  ;;  %v1173_v40 = vld [vmem:[#allocation2 + $0x8] sm:$0xf] }
  0xb9   : > { %674 = vrot.lane.b32.xlu1 %v2416_v35, %s2317_s4  ;;  %v1342_v41 = vld [vmem:[#allocation2 + $0x8] sm:$0xf] }
  0xba   : > { %v1511_v42 = vld [vmem:[#allocation2 + $0x8] sm:$0xf] }
  0xbb   : > { %v1680_v43 = vld [vmem:[#allocation2 + $0x8] sm:$0xf] }
  0xbc   : > { %676 = vrot.lane.b32.xlu0 %v666_v37, %s2317_s4 }
  0xbd   : > { %672 = vrot.lane.b32.xlu1 %v2412_v34, %s2317_s4  ;;  %s2558_s4 = scalar_lea.hbm %s2608_s3, %s2133_s27 }
  0xc0   : > { %843 = vrot.lane.b32.xlu0 %v2416_v35, %s2318_s5 }
  0xc1   : > { %845 = vrot.lane.b32.xlu1 %v835_v38, %s2318_s5 }
  0xc4   : > { %841 = vrot.lane.b32.xlu0 %v2412_v34, %s2318_s5  ;;  %s1862_s5 = scalar_lea.sflag [#allocation4], %s213_s21 }
  0xc5   : > { %1012 = vrot.lane.b32.xlu1 %v2416_v35, %s2319_s6 }
  0xc8   : > { %1014 = vrot.lane.b32.xlu0 %v1004_v39, %s2319_s6 }
  0xc9   : > { %1010 = vrot.lane.b32.xlu1 %v2412_v34, %s2319_s6  ;;  %s2218_s6 = scalar_lea.vmem %s2560_s28, 384 }
  0xca   : > { %p2219_p12 = scmp.ne.s32.totalorder %s2560_s28, %s2218_s6 }
  0xcc   : > { %1181 = vrot.lane.b32.xlu0 %v2416_v35, %s2320_s7  ;;  %p2220_p13 = pnand %p2219_p12, %p2386_p4 }
  0xcd   : > { %1183 = vrot.lane.b32.xlu1 %v1173_v40, %s2320_s7 }
  0xce   : > { %p2221_p0 = pneg %p2220_p13 }
  0xd0   : > { %1179 = vrot.lane.b32.xlu0 %v2412_v34, %s2320_s7  ;;  %s2222_s7 = sshll.u32 %s2325_s15, 4  ;;  %s2223_s7 = int_to_ptr.vmem [resolvable:$false] %s2222_s7 }
  0xd1   : > { %1350 = vrot.lane.b32.xlu1 %v2416_v35, %s2321_s8  ;;  %p2225_p1 = scmp.lt.s32.totalorder %s2560_s28, %s2223_s7 }
  0xd4   : > { %1352 = vrot.lane.b32.xlu0 %v1342_v41, %s2321_s8 }
  0xd5   : > { %1348 = vrot.lane.b32.xlu1 %v2412_v34, %s2321_s8  ;;  %s2224_s8 = scalar_lea.vmem %s2223_s7, 768 }
  0xd6   : > { %p2226_p2 = scmp.lt.s32.totalorder %s2224_s8, %s2218_s6 }
  0xd8   : > { %1519 = vrot.lane.b32.xlu0 %v2416_v35, %s2322_s9  ;;  %p2227_p3 = por %p2226_p2, %p2225_p1 }
  0xd9   : > { %1521 = vrot.lane.b32.xlu1 %v1511_v42, %s2322_s9 }
  0xda   : > { %p2228_p5 = pnand %p2227_p3, %p2221_p0 }
  0xdc   : > { %1517 = vrot.lane.b32.xlu0 %v2412_v34, %s2322_s9 }
  0xdd   : > { %1688 = vrot.lane.b32.xlu1 %v2416_v35, %s2323_s10 }
  0xe0   : > { %1690 = vrot.lane.b32.xlu0 %v1680_v43, %s2323_s10 }
  0xe1   : > { %1686 = vrot.lane.b32.xlu1 %v2412_v34, %s2323_s10 }
  0xe4   : > { %1851 = vperm.xlu0 %2216, %v1848_v44  }
 0x126   : > { %v357_v46 = vpop.permute.xlu0 %356 }
 0x127   : > { %v359_v47 = vpop.permute.xlu1 %358 }
 0x128   : > { %2072 = vmatpush3.msk.msra.mxu1 %vm367_vm13, %v359_v47  ;;  %v362_v49 = vsel %vm360_vm14, %v357_v46, %v359_v47 }
 0x129   : > { %1997 = vmatprep.subr.msk.mxu0 %vm367_vm13, %v362_v49  ;;  %2076 = vmatprep.subr.mxu1 %v2298_v0 }
 0x12a   : > { %2074 = vmatmul.mubr.msk.f32.vlgmr.msra.gmra.mrb[0].mxu1 %vm363_vm15, %v1996_v48  ;;  %v355_v50 = vpop.permute.xlu0 %354 }
 0x12b   : > { %2077 = vmatpush3.msk.msra.mxu1 %vm367_vm13, %v347_v36  ;;  %v675_v51 = vpop.permute.xlu1 %674  ;;  %v361_v52 = vsel %vm360_vm14, %v355_v50, %v357_v46  ;;  %2078 = vmatprep.mubr.msk.f32.mxu1 %vm2315_vm11, %v2298_v0 }
 0x12c   : > { %1998 = vmatpush1.msk.msra.mxu0 %vm367_vm13, %v361_v52  ;;  %2081 = vmatprep.subr.mxu1 %v2298_v0 }
 0x12d   : > { %1999 = vmatmul.mubr.msk.f32.vlgmr.msra.gmra.mrb[0].mxu0 %vm363_vm15, %v1996_v48  ;;  %2002 = vmatprep.subr.msk.mxu0 %vm367_vm13, %v2416_v35 }
 0x12e   : > { %2003 = vmatpush1.msk.msra.mxu0 %vm367_vm13, %v2412_v34  ;;  %v677_v54 = vpop.permute.xlu0 %676  ;;  %2079 = vmatmul.mubr.msk.f32.vlgmr.msra.gmra.mrb[2].mxu1 %vm363_vm15, %v348_v53 }
 0x12f   : > { %v680_v55 = vsel %vm678_vm0, %v675_v51, %v677_v54  ;;  %v673_v56 = vpop.permute.xlu1 %672  ;;  %2082 = vmatpush3.msk.msra.mxu1 %vm367_vm13, %v677_v54  ;;  %2083 = vmatprep.mubr.msk.f32.mxu1 %vm2315_vm11, %v2298_v0 }
 0x130   : > { %2008 = vmatprep.subr.msk.mxu0 %vm367_vm13, %v680_v55  ;;  %2086 = vmatprep.subr.mxu1 %v2298_v0  ;;  %v679_v62 = vsel %vm678_vm0, %v673_v56, %v675_v51 }
 0x131   : > { %588 = vmatprep.mubr.f32.mxu0 %v2298_v0 }
 0x132   : > { %v844_v58 = vpop.permute.xlu0 %843  ;;  %2084 = vmatmul.mubr.msk.f32.vlgmr.msra.gmra.mrb[4].mxu1 %vm363_vm15, %v2007_v57 }
 0x133   : > { %v846_v59 = vpop.permute.xlu1 %845  ;;  %2088 = vmatprep.mubr.msk.f32.mxu1 %vm2315_vm11, %v2298_v0 }
 0x134   : > { %v849_v61 = vsel %vm847_vm1, %v844_v58, %v846_v59  ;;  %2087 = vmatpush3.msk.msra.mxu1 %vm367_vm13, %v846_v59 }
 0x135   : > { %2004 = vmatmul.mubr.msk.f32.vlgmr.msra.gmra.mrb[0].mxu0 %vm363_vm15, %v348_v53  ;;  %2091 = vmatprep.subr.mxu1 %v2298_v0 }
 0x136   : > { %2009 = vmatpush1.msk.msra.mxu0 %vm367_vm13, %v679_v62  ;;  %v842_v63 = vpop.permute.xlu0 %841  ;;  %2089 = vmatmul.mubr.msk.f32.vlgmr.msra.gmra.mrb[6].mxu1 %vm363_vm15, %v2013_v60 }
 0x137   : > { %2014 = vmatprep.subr.msk.mxu0 %vm367_vm13, %v849_v61  ;;  %v1013_v1 = vpop.permute.xlu1 %1012  ;;  %754 = vmatprep.mubr.f32.mxu0 %v2298_v0  ;;  %v848_v5 = vsel %vm847_vm1, %v842_v63, %v844_v58 }
 0x138   : > { %2093 = vmatprep.mubr.msk.f32.mxu1 %vm2315_vm11, %v2298_v0 }
 0x13a   : > { %v1015_v3 = vpop.permute.xlu0 %1014 }
 0x13b   : > { %v1011_v4 = vpop.permute.xlu1 %1010  ;;  %2092 = vmatpush3.msk.msra.mxu1 %vm367_vm13, %v1015_v3  ;;  %v1018_v6 = vsel %vm1016_vm2, %v1013_v1, %v1015_v3 }
 0x13c   : > { %2096 = vmatprep.subr.mxu1 %v2298_v0  ;;  %2094 = vmatmul.mubr.msk.f32.vlgmr.msra.gmra.mrb[8].mxu1 %vm363_vm15, %v2019_v2  ;;  %v1017_v12 = vsel %vm1016_vm2, %v1011_v4, %v1013_v1 }
 0x13d   : > { %2010 = vmatmul.mubr.msk.f32.vlgmr.msra.gmra.mrb[0].mxu0 %vm363_vm15, %v2007_v57  ;;  %2098 = vmatprep.mubr.msk.f32.mxu1 %vm2315_vm11, %v2298_v0 }
 0x13e   : > { %2015 = vmatpush1.msk.msra.mxu0 %vm367_vm13, %v848_v5  ;;  %v1182_v7 = vpop.permute.xlu0 %1181  ;;  %923 = vmatprep.mubr.f32.mxu0 %v2298_v0 }
 0x13f   : > { %2020 = vmatprep.subr.msk.mxu0 %vm367_vm13, %v1018_v6  ;;  %v1184_v9 = vpop.permute.xlu1 %1183 }
 0x140   : > { %2097 = vmatpush3.msk.msra.mxu1 %vm367_vm13, %v1184_v9  ;;  %v1187_v14 = vsel %vm1185_vm3, %v1182_v7, %v1184_v9 }
 0x141   : > { %2101 = vmatprep.subr.mxu1 %v2298_v0  ;;  %2099 = vmatmul.mubr.msk.f32.vlgmr.msra.gmra.mrb[10].mxu1 %vm363_vm15, %v2025_v8 }
 0x142   : > { %v1180_v10 = vpop.permute.xlu0 %1179  ;;  %2103 = vmatprep.mubr.msk.f32.mxu1 %vm2315_vm11, %v2298_v0 }
 0x143   : > { %v1351_v11 = vpop.permute.xlu1 %1350  ;;  %v1186_v20 = vsel %vm1185_vm3, %v1180_v10, %v1182_v7 }
 0x145   : > { %2016 = vmatmul.mubr.msk.f32.vlgmr.msra.gmra.mrb[0].mxu0 %vm363_vm15, %v2013_v60 }
 0x146   : > { %2021 = vmatpush1.msk.msra.mxu0 %vm367_vm13, %v1017_v12  ;;  %v1353_v15 = vpop.permute.xlu0 %1352  ;;  %1092 = vmatprep.mubr.f32.mxu0 %v2298_v0 }
 0x147   : > { %2026 = vmatprep.subr.msk.mxu0 %vm367_vm13, %v1187_v14  ;;  %v1349_v16 = vpop.permute.xlu1 %1348  ;;  %2102 = vmatpush3.msk.msra.mxu1 %vm367_vm13, %v1353_v15  ;;  %v1356_v21 = vsel %vm1354_vm4, %v1351_v11, %v1353_v15 }
 0x148   : > { %2106 = vmatprep.subr.mxu1 %v2298_v0  ;;  %2104 = vmatmul.mubr.msk.f32.vlgmr.msra.gmra.mrb[12].mxu1 %vm363_vm15, %v2031_v13  ;;  %v1355_v25 = vsel %vm1354_vm4, %v1349_v16, %v1351_v11 }
 0x149   : > { %2108 = vmatprep.mubr.msk.f32.mxu1 %vm2315_vm11, %v2298_v0 }
 0x14a   : > { %v1520_v17 = vpop.permute.xlu0 %1519 }
 0x14b   : > { %v1522_v18 = vpop.permute.xlu1 %1521 }
 0x14c   : > { %2107 = vmatpush3.msk.msra.mxu1 %vm367_vm13, %v1522_v18  ;;  %v1525_v26 = vsel %vm1523_vm5, %v1520_v17, %v1522_v18 }
 0x14d   : > { %2022 = vmatmul.mubr.msk.f32.vlgmr.msra.gmra.mrb[0].mxu0 %vm363_vm15, %v2019_v2  ;;  %2111 = vmatprep.subr.mxu1 %v2298_v0 }
 0x14e   : > { %2027 = vmatpush1.msk.msra.mxu0 %vm367_vm13, %v1186_v20  ;;  %v1518_v22 = vpop.permute.xlu0 %1517  ;;  %2109 = vmatmul.mubr.msk.f32.vlgmr.msra.gmra.mrb[14].mxu1 %vm363_vm15, %v2037_v19 }
 0x14f   : > { %2032 = vmatprep.subr.msk.mxu0 %vm367_vm13, %v1356_v21  ;;  %1261 = vmatprep.mubr.f32.mxu0 %v2298_v0  ;;  %v1689_v27 = vpop.permute.xlu1 %1688  ;;  %v1524_v28 = vsel %vm1523_vm5, %v1518_v22, %v1520_v17 }
 0x150   : > { %2113 = vmatprep.mubr.msk.f32.mxu1 %vm2315_vm11, %v2298_v0 }
 0x152   : > { %v1691_v24 = vpop.permute.xlu0 %1690 }
 0x153   : > { %2112 = vmatpush3.msk.msra.mxu1 %vm367_vm13, %v1691_v24  ;;  %v1694_v29 = vsel %vm1692_vm6, %v1689_v27, %v1691_v24  ;;  %v1687_v30 = vpop.permute.xlu1 %1686 }
 0x154   : > { %2114 = vmatmul.mubr.msk.f32.vlgmr.msra.gmra.mrb[16].mxu1 %vm363_vm15, %v2043_v23  ;;  %v1693_v31 = vsel %vm1692_vm6, %v1687_v30, %v1689_v27 }
 0x155   : > { %2028 = vmatmul.mubr.msk.f32.vlgmr.msra.gmra.mrb[0].mxu0 %vm363_vm15, %v2025_v8 }
 0x156   : > { %2033 = vmatpush1.msk.msra.mxu0 %vm367_vm13, %v1355_v25  ;;  %1430 = vmatprep.mubr.f32.mxu0 %v2298_v0 }
 0x157   : > { %2038 = vmatprep.subr.msk.mxu0 %vm367_vm13, %v1525_v26 }
 0x15d   : > { %2034 = vmatmul.mubr.msk.f32.vlgmr.msra.gmra.mrb[0].mxu0 %vm363_vm15, %v2031_v13 }
 0x15e   : > { %2039 = vmatpush1.msk.msra.mxu0 %vm367_vm13, %v1524_v28  ;;  %1599 = vmatprep.mubr.f32.mxu0 %v2298_v0 }
 0x15f   : > { %2044 = vmatprep.subr.msk.mxu0 %vm367_vm13, %v1694_v29 }
 0x163   : > { %v1852_v55 = vpop.permute.xlu0 %1851 }
 0x165   : > { %2040 = vmatmul.mubr.msk.f32.vlgmr.msra.gmra.mrb[0].mxu0 %vm363_vm15, %v2037_v19 }
 0x166   : > { %2045 = vmatpush1.msk.msra.mxu0 %vm367_vm13, %v1693_v31  ;;  %1768 = vmatprep.mubr.f32.mxu0 %v2298_v0 }
 0x16d   : > { %2046 = vmatmul.mubr.msk.f32.vlgmr.msra.gmra.mrb[0].mxu0 %vm363_vm15, %v2043_v23 }
 0x1fd   : > { %v511_v32 = vpop.f32.mrb[0].mxu1 }
 0x1fe   : > { %v2075_v33 = vpop.f32.mrb[1].mxu1 }
 0x201   : > { %v661_v34 = vpop.f32.mrb[2].mxu1 }
 0x202   : > { %v662_v35 = vadd.f32 %v661_v34, %v511_v32  ;;  %v2080_v36 = vpop.f32.mrb[3].mxu1 }
 0x205   : > { %v827_v37 = vpop.f32.mrb[4].mxu1 }
 0x206   : > { %v833_v38 = vadd.f32 %v827_v37, %v662_v35  ;;  %v2085_v39 = vpop.f32.mrb[5].mxu1 }
 0x209   : > { %v996_v40 = vpop.f32.mrb[6].mxu1 }
 0x20a   : > { %v1002_v41 = vadd.f32 %v996_v40, %v833_v38  ;;  %v2090_v42 = vpop.f32.mrb[7].mxu1 }
 0x20f   : > { %v1165_v43 = vpop.f32.mrb[8].mxu1 }
 0x210   : > { %v1171_v44 = vadd.f32 %v1165_v43, %v1002_v41  ;;  %v2095_v45 = vpop.f32.mrb[9].mxu1 }
 0x214   : > { %v1334_v46 = vpop.f32.mrb[10].mxu1 }
 0x215   : > { %v1340_v47 = vadd.f32 %v1334_v46, %v1171_v44  ;;  %v2100_v0 = vpop.f32.mrb[11].mxu1 }
 0x21b   : > { %v1503_v48 = vpop.f32.mrb[12].mxu1 }
 0x21c   : > { %v1509_v49 = vadd.f32 %v1503_v48, %v1340_v47  ;;  %v2105_v50 = vpop.f32.mrb[13].mxu1 }
 0x221   : > { %v1672_v51 = vpop.f32.mrb[14].mxu1 }
 0x222   : > { %v1678_v52 = vadd.f32 %v1672_v51, %v1509_v49  ;;  %v2110_v53 = vpop.f32.mrb[15].mxu1 }
 0x227   : > { %v1841_v54 = vpop.f32.mrb[16].mxu1 }
 0x228   : > { %v1847_v56 = vadd.f32 %v1841_v54, %v1678_v52  ;;  %v2115_v57 = vpop.f32.mrb[17].mxu1 }
 0x22a   : > { %v1856_v58 = vadd.f32 %v1852_v55, %v1847_v56 }
 0x22c   : > { %1860 = vst.msk [vmem:[%s215_s26 + $0x10] sm:$0xff] %vm1859_vm7, %v1856_v58 }
 0x240   : > { %v1770_v59 = vpop.f32.mrb[0].mxu0 }
 0x241   : > { %v1854_v60 = vadd.f32 %v1852_v55, %v1770_v59  ;;  %v1772_v61 = vpop.f32.mrb[1].mxu0 }
 0x242   : > { %v1855_v62 = vadd.f32 %v1852_v55, %v1772_v61 }
 0x243   : > { %1857 = vst [vmem:[%s215_s26] sm:$0xff] %v1854_v60 }
 0x244   : > { %1858 = vst [vmem:[%s215_s26 + $0x8] sm:$0xff] %v1855_v62 }
 0x245   : > { %2231 = shalt.err (!%p2228_p5)
}
 0x246   : > { %s2232_s9 = scalar_lea.hbm %s2558_s4, 384  ;;  %s2236_s18 = scalar_lea.hbm %s2608_s3, 768 }
 0x247   : > { %p2233_p6 = scmp.ne.s32.totalorder %s2558_s4, %s2232_s9  ;;  %p2237_p10 = scmp.lt.u32.totalorder %s2558_s4, %s2608_s3 }
 0x248   : > { %p2238_p11 = scmp.lt.u32.totalorder %s2236_s18, %s2232_s9  ;;  %p2240_p13 = scmp.lt.u32.totalorder %s2232_s9, %s2558_s4 }
 0x249   : > { %p2234_p7 = pnand %p2233_p6, %p2386_p4 }
 0x24a   : > { %p2239_p12 = por %p2238_p11, %p2237_p10 }
 0x24b   : > { %p2235_p9 = pneg %p2234_p7 }
 0x24c   : > { %p2241_p0 = por %p2240_p13, %p2239_p12 }
 0x24e   : > { %p2242_p1 = pnand %p2241_p0, %p2235_p9 }
 0x250   : > { %2245 = shalt.err (!%p2242_p1)
}
 0x251   : > { %2134 = dma.vmem_to_hbm [thread:$0]  (%p2386_p4), %s2560_s28, 384, %s2558_s4, %s1862_s5  }
 0x252 PF: > { %p2140_p2 = scmp.ge.s32.totalorder %s2296_s17, 2  ;;  %s1890_s23 = sand.u32 1, %s2276_s12  }
 0x253   : > { %s1891_s26 = scalar_lea.sflag [#allocation4], %s1890_s23 }
 0x254   : > { %p2137_p3 = pnand %p2140_p2, %p2393_p8 }
 0x256   : > { %2271 = dma.done.wait (!%p2137_p3), %s1891_s26, 384  }
 0x257   : > { %2273 = vsyncadd (!%p2137_p3), %s1891_s26, 4294966912  ;;  %s16_s17 = sadd.s32 1, %s2296_s17   ;;  %s2611_s12 = smov %s2280_s13 }
 0x258   : > { %p13_p5 = scmp.ge.s32.totalorder %s16_s17, 4   ;;  %s2612_s13 = smov %s2284_s14 }
 0x259   : > { %s2613_s14 = smov %s2399_s25  ;;  %s2614_s15 = smov %s2292_s16 }
 0x25a   : > { %s2615_s16 = smov %s2617_s20  ;;  %15 = sbr.rel (!%p13_p5) target bundleno = 4 (0x4), region = 81 }
 0x261   :  { %1896 = vsyncpa [#allocation4], 1 }
 0x262   :  { %1898 = vsyncpa [#allocation4 + $0x1], 1 }

</bundles_post_ra>
